<compile_context>
chip_gen: v7x
topology: tpu7x:2x2x1
jax: 0.10.0
libtpu: 0.0.40
codegen_flags: <defaults>
</compile_context>

<pallas_src>
import jax
import jax.numpy as jnp
from jax.experimental import pallas as pl
from jax.experimental.pallas import tpu as pltpu

_HIDDEN = 64          # PyTorch hidden width
_HIDDEN_PAD = 128     # zero-padded to a full 128-lane vreg / MXU-friendly K
_ROW_ALIGN = 16       # bf16 sublane packing: (16, 128) native tile
_DEFAULT_TILE_M = 1024


def _round_up(n, m):
    return ((n + m - 1) // m) * m


def _pick_tile_m(batch):
    """Batch tile: 16-row aligned, capped at 1024, >=2 grid steps when the batch
    allows it so v7x megacore can shard the parallel axis across both TensorCores."""
    if batch <= _ROW_ALIGN:
        return _ROW_ALIGN
    half = _round_up((batch + 1) // 2, _ROW_ALIGN)
    return min(_DEFAULT_TILE_M, half)


def _mlp_kernel(x_ref, w1_ref, b1_ref, w2_ref, b2_ref, w3_ref, b3_ref, out_ref):
    """One batch tile of the 3-layer MLP: bf16 matmuls on the MXU, f32 bias+ReLU on the VPU."""
    # x arrives as f32 straight from HBM; cast to bf16 here instead of a separate
    # XLA convert pass in the wrapper (halves x HBM traffic, removes a fusion boundary).
    x = x_ref[...].astype(jnp.bfloat16)
    h1 = jnp.dot(x, w1_ref[...], preferred_element_type=jnp.float32) + b1_ref[...]
    h1 = jnp.maximum(h1, 0.0)
    h2 = jnp.dot(h1.astype(jnp.bfloat16), w2_ref[...],
                 preferred_element_type=jnp.float32) + b2_ref[...]
    h2 = jnp.maximum(h2, 0.0)
    q = jnp.dot(h2.astype(jnp.bfloat16), w3_ref[...],
                preferred_element_type=jnp.float32) + b3_ref[...]
    out_ref[...] = q.astype(out_ref.dtype)


@jax.jit
def _dqn_forward(x, w1, b1, w2, b2, w3, b3):
    """Forward pass: grid over batch, weights resident in VMEM, narrow f32 output."""
    batch, in_features = x.shape
    hidden = w1.shape[1]
    out_w = w3.shape[1]           # exactly the q width (no 128-lane padding)

    tile_m = _pick_tile_m(batch)
    batch_pad = _round_up(batch, tile_m)
    xp = x if batch_pad == batch else jnp.pad(x, ((0, batch_pad - batch), (0, 0)))

    flops = 2 * batch_pad * (in_features * hidden + hidden * hidden + hidden * out_w)
    bytes_accessed = (
        xp.size * xp.dtype.itemsize
        + batch_pad * out_w * 4
        + sum(int(p.size) * p.dtype.itemsize for p in (w1, b1, w2, b2, w3, b3)))

    const = lambda shape: pl.BlockSpec(shape, lambda i: (0, 0))

    out = pl.pallas_call(
        _mlp_kernel,
        out_shape=jax.ShapeDtypeStruct((batch_pad, out_w), jnp.float32),
        grid=(batch_pad // tile_m,),
        in_specs=[
            pl.BlockSpec((tile_m, in_features), lambda i: (i, 0)),   # streamed
            const(w1.shape), const(b1.shape),                        # resident
            const(w2.shape), const(b2.shape),
            const(w3.shape), const(b3.shape),
        ],
        out_specs=pl.BlockSpec((tile_m, out_w), lambda i: (i, 0)),
        compiler_params=pltpu.CompilerParams(dimension_semantics=("parallel",)),
        cost_estimate=pl.CostEstimate(
            flops=flops, transcendentals=0, bytes_accessed=bytes_accessed),
    )(xp, w1, b1, w2, b2, w3, b3)

    return out[:batch]


def _init_linear(key, fan_in, fan_out):
    """PyTorch default Linear init U(-1/sqrt(fan_in), 1/sqrt(fan_in)), stored as [in, out]."""
    kw, kb = jax.random.split(key)
    bound = 1.0 / (float(fan_in) ** 0.5)
    w = jax.random.uniform(kw, (fan_in, fan_out), jnp.float32, -bound, bound)
    b = jax.random.uniform(kb, (1, fan_out), jnp.float32, -bound, bound)
    # Weights in bf16 (MXU-native), biases in f32 (f32 VPU epilogue).
    return w.astype(jnp.bfloat16), b


def _pad_hidden(params):
    """Zero-pad the 64-wide hidden dim to 128 lanes. Numerics unchanged (ReLU(0)=0,
    zero padded weights/biases contribute exact zeros to the f32 accumulators)."""
    w1, b1, w2, b2, w3, b3 = params
    p = _HIDDEN_PAD - _HIDDEN
    return (jnp.pad(w1, ((0, 0), (0, p))),
            jnp.pad(b1, ((0, 0), (0, p))),
            jnp.pad(w2, ((0, p), (0, p))),
            jnp.pad(b2, ((0, 0), (0, p))),
            jnp.pad(w3, ((0, p), (0, 0))),
            b3)


def _fuse_block_diag(online, target):
    """Block-diagonal fusion of the two heads: online occupies hidden lanes 0-63,
    target lanes 64-127; x is read once, every matmul has K=128, output is
    [B, 2*out_size] = (online | target)."""
    w1o, b1o, w2o, b2o, w3o, b3o = online
    w1t, b1t, w2t, b2t, w3t, b3t = target
    w1 = jnp.concatenate([w1o, w1t], axis=1)
    b1 = jnp.concatenate([b1o, b1t], axis=1)
    w2 = jnp.concatenate(
        [jnp.concatenate([w2o, jnp.zeros_like(w2o)], axis=1),
         jnp.concatenate([jnp.zeros_like(w2t), w2t], axis=1)], axis=0)
    b2 = jnp.concatenate([b2o, b2t], axis=1)
    w3 = jnp.concatenate(
        [jnp.concatenate([w3o, jnp.zeros_like(w3o)], axis=1),
         jnp.concatenate([jnp.zeros_like(w3t), w3t], axis=1)], axis=0)
    b3 = jnp.concatenate([b3o, b3t], axis=1)
    return w1, b1, w2, b2, w3, b3


class PokeNetPallas:
    """JAX/Pallas port of PokeNet: online + target DQN MLPs."""

    HIDDEN = _HIDDEN

    def __init__(self, input_shape, output_size, key):
        dims = input_shape if isinstance(input_shape, (tuple, list)) else (input_shape,)
        input_size = 1
        for d in dims:
            input_size *= int(d)
        self.input_size = input_size
        self.output_size = int(output_size)

        k1, k2, k3 = jax.random.split(key, 3)
        raw_online = (*_init_linear(k1, input_size, self.HIDDEN),
                      *_init_linear(k2, self.HIDDEN, self.HIDDEN),
                      *_init_linear(k3, self.HIDDEN, self.output_size))
        # target.load_state_dict(online.state_dict()) -> identical frozen copy.
        raw_target = tuple(jnp.array(p) for p in raw_online)
        self.raw_online, self.raw_target = raw_online, raw_target

        # Hidden dim zero-padded 64 -> 128 for full-lane vregs / clean MXU K.
        # NOTE: padded regions must stay exactly zero if params are ever reloaded.
        self.online = _pad_hidden(raw_online)
        self.target = _pad_hidden(raw_target)
        # Pre-built block-diagonal fusion of both heads for forward_both().
        self._fused = _fuse_block_diag(raw_online, raw_target)

    def __call__(self, x, model):
        if model == "online":
            params = self.online
        elif model == "target":
            params = self.target
        else:
            raise ValueError(f"unknown model: {model}")
        return _dqn_forward(x, *params)

    def forward_both(self, x):
        """Evaluate online and target in ONE pallas_call -> [2, B, output_size]."""
        out = _dqn_forward(x, *self._fused)            # [B, 2*output_size]
        n = self.output_size
        return jnp.stack([out[:, :n], out[:, n:]])


if __name__ == "__main__":
    key = jax.random.PRNGKey(0)
    k_net, k_x = jax.random.split(key)

    # Small shapes consistent with the module: observation flattens to 32 features,
    # 8 discrete actions, batch of 2.
    input_shape = (4, 8)      # prod -> input_size = 32
    output_size = 8
    batch = 2

    net = PokeNetPallas(input_shape, output_size, k_net)
    x = jax.random.normal(k_x, (batch, 32), jnp.float32)

    q_online = net(x, "online")
    q_target = net(x, "target")
    q_both = net.forward_both(x)
    jax.block_until_ready((q_online, q_target, q_both))

    # Reference in plain JAX on the UNPADDED params, same bf16-operand /
    # f32-accumulate recipe (verifies the zero hidden-padding is numerically inert).
    w1, b1, w2, b2, w3, b3 = net.raw_online
    xb = x.astype(jnp.bfloat16)
    h = jnp.maximum(jnp.dot(xb, w1, preferred_element_type=jnp.float32) + b1, 0.0)
    h = jnp.maximum(
        jnp.dot(h.astype(jnp.bfloat16), w2, preferred_element_type=jnp.float32) + b2, 0.0)
    ref = jnp.dot(h.astype(jnp.bfloat16), w3, preferred_element_type=jnp.float32) + b3

    assert q_online.shape == (batch, output_size)
    assert q_both.shape == (2, batch, output_size)
    assert jnp.allclose(q_online, ref, atol=1e-4, rtol=1e-4)
    assert jnp.allclose(q_online, q_target, atol=0.0, rtol=0.0)      # identical copies
    assert jnp.allclose(q_both[0], q_online, atol=1e-5, rtol=1e-5)
    assert jnp.allclose(q_both[1], q_target, atol=1e-5, rtol=1e-5)

    print("KERNEL_OK")
</pallas_src>

<mosaic_0001>
module attributes {stable_mosaic.version = 11 : i64} {
  func.func @_mlp_kernel(%arg0: i32, %arg1: memref<16x32xf32, #tpu.memory_space<vmem>>, %arg2: memref<32x128xbf16, #tpu.memory_space<vmem>>, %arg3: memref<1x128xf32, #tpu.memory_space<vmem>>, %arg4: memref<128x128xbf16, #tpu.memory_space<vmem>>, %arg5: memref<1x128xf32, #tpu.memory_space<vmem>>, %arg6: memref<128x8xbf16, #tpu.memory_space<vmem>>, %arg7: memref<1x8xf32, #tpu.memory_space<vmem>>, %arg8: memref<16x8xf32, #tpu.memory_space<vmem>>) attributes {dimension_semantics = [#tpu.dimension_semantics<parallel>], iteration_bounds = array<i64: 1>, scalar_prefetch = 0 : i64, scratch_operands = 0 : i64, tpu.core_type = #tpu.core_type<tc>, window_params = [{transform_indices = @transform_0, window_bounds = array<i64: 16, 32>}, {pipeline_mode = #tpu.pipeline_mode<synchronous>, transform_indices = @transform_1, window_bounds = array<i64: 32, 128>}, {pipeline_mode = #tpu.pipeline_mode<synchronous>, transform_indices = @transform_2, window_bounds = array<i64: 1, 128>}, {pipeline_mode = #tpu.pipeline_mode<synchronous>, transform_indices = @transform_3, window_bounds = array<i64: 128, 128>}, {pipeline_mode = #tpu.pipeline_mode<synchronous>, transform_indices = @transform_4, window_bounds = array<i64: 1, 128>}, {pipeline_mode = #tpu.pipeline_mode<synchronous>, transform_indices = @transform_5, window_bounds = array<i64: 128, 8>}, {pipeline_mode = #tpu.pipeline_mode<synchronous>, transform_indices = @transform_6, window_bounds = array<i64: 1, 8>}, {transform_indices = @transform_7, window_bounds = array<i64: 16, 8>}]} {
    %c0 = arith.constant 0 : index
    %c0_0 = arith.constant 0 : index
    %0 = vector.load %arg1[%c0, %c0_0] : memref<16x32xf32, #tpu.memory_space<vmem>>, vector<16x32xf32>
    %1 = arith.truncf %0 : vector<16x32xf32> to vector<16x32xbf16>
    %c0_1 = arith.constant 0 : index
    %c0_2 = arith.constant 0 : index
    %2 = vector.load %arg2[%c0_1, %c0_2] : memref<32x128xbf16, #tpu.memory_space<vmem>>, vector<32x128xbf16>
    %cst = arith.constant dense<0.000000e+00> : vector<16x128xf32>
    %3 = tpu.matmul %1, %2, %cst {dimension_numbers = #tpu.dot_dimension_numbers<[1], [0], [0], [1], [0, 0, 1, 1], [], []>} : vector<16x32xbf16>, vector<32x128xbf16>, vector<16x128xf32> -> vector<16x128xf32>
    %c0_3 = arith.constant 0 : index
    %c0_4 = arith.constant 0 : index
    %4 = vector.load %arg3[%c0_3, %c0_4] : memref<1x128xf32, #tpu.memory_space<vmem>>, vector<1x128xf32>
    %5 = vector.broadcast %4 : vector<1x128xf32> to vector<16x128xf32>
    %6 = arith.addf %3, %5 : vector<16x128xf32>
    %cst_5 = arith.constant 0.000000e+00 : f32
    %7 = vector.broadcast %cst_5 : f32 to vector<16x128xf32>
    %8 = arith.maximumf %6, %7 : vector<16x128xf32>
    %9 = arith.truncf %8 : vector<16x128xf32> to vector<16x128xbf16>
    %c0_6 = arith.constant 0 : index
    %c0_7 = arith.constant 0 : index
    %10 = vector.load %arg4[%c0_6, %c0_7] : memref<128x128xbf16, #tpu.memory_space<vmem>>, vector<128x128xbf16>
    %cst_8 = arith.constant dense<0.000000e+00> : vector<16x128xf32>
    %11 = tpu.matmul %9, %10, %cst_8 {dimension_numbers = #tpu.dot_dimension_numbers<[1], [0], [0], [1], [0, 0, 1, 1], [], []>} : vector<16x128xbf16>, vector<128x128xbf16>, vector<16x128xf32> -> vector<16x128xf32>
    %c0_9 = arith.constant 0 : index
    %c0_10 = arith.constant 0 : index
    %12 = vector.load %arg5[%c0_9, %c0_10] : memref<1x128xf32, #tpu.memory_space<vmem>>, vector<1x128xf32>
    %13 = vector.broadcast %12 : vector<1x128xf32> to vector<16x128xf32>
    %14 = arith.addf %11, %13 : vector<16x128xf32>
    %cst_11 = arith.constant 0.000000e+00 : f32
    %15 = vector.broadcast %cst_11 : f32 to vector<16x128xf32>
    %16 = arith.maximumf %14, %15 : vector<16x128xf32>
    %17 = arith.truncf %16 : vector<16x128xf32> to vector<16x128xbf16>
    %c0_12 = arith.constant 0 : index
    %c0_13 = arith.constant 0 : index
    %18 = vector.load %arg6[%c0_12, %c0_13] : memref<128x8xbf16, #tpu.memory_space<vmem>>, vector<128x8xbf16>
    %cst_14 = arith.constant dense<0.000000e+00> : vector<16x8xf32>
    %19 = tpu.matmul %17, %18, %cst_14 {dimension_numbers = #tpu.dot_dimension_numbers<[1], [0], [0], [1], [0, 0, 1, 1], [], []>} : vector<16x128xbf16>, vector<128x8xbf16>, vector<16x8xf32> -> vector<16x8xf32>
    %c0_15 = arith.constant 0 : index
    %c0_16 = arith.constant 0 : index
    %20 = vector.load %arg7[%c0_15, %c0_16] : memref<1x8xf32, #tpu.memory_space<vmem>>, vector<1x8xf32>
    %21 = vector.broadcast %20 : vector<1x8xf32> to vector<16x8xf32>
    %22 = arith.addf %19, %21 : vector<16x8xf32>
    %c0_17 = arith.constant 0 : index
    %c0_18 = arith.constant 0 : index
    %23 = vector.load %arg8[%c0_17, %c0_18] : memref<16x8xf32, #tpu.memory_space<vmem>>, vector<16x8xf32>
    tpu.vector_store %arg8[%c0_17, %c0_18], %22 {strides = array<i32>} : memref<16x8xf32, #tpu.memory_space<vmem>>, vector<16x8xf32>,
    return
  }
  func.func @transform_0(%arg0: i32) -> (i32, i32) {
    %c0_i32 = arith.constant 0 : i32
    %c0_i32_0 = arith.constant 0 : i32
    return %arg0, %c0_i32 : i32, i32
  }
  func.func @transform_1(%arg0: i32) -> (i32, i32) {
    %c0_i32 = arith.constant 0 : i32
    %c0_i32_0 = arith.constant 0 : i32
    %c0_i32_1 = arith.constant 0 : i32
    return %c0_i32, %c0_i32_0 : i32, i32
  }
  func.func @transform_2(%arg0: i32) -> (i32, i32) {
    %c0_i32 = arith.constant 0 : i32
    %c0_i32_0 = arith.constant 0 : i32
    %c0_i32_1 = arith.constant 0 : i32
    return %c0_i32, %c0_i32_0 : i32, i32
  }
  func.func @transform_3(%arg0: i32) -> (i32, i32) {
    %c0_i32 = arith.constant 0 : i32
    %c0_i32_0 = arith.constant 0 : i32
    %c0_i32_1 = arith.constant 0 : i32
    return %c0_i32, %c0_i32_0 : i32, i32
  }
  func.func @transform_4(%arg0: i32) -> (i32, i32) {
    %c0_i32 = arith.constant 0 : i32
    %c0_i32_0 = arith.constant 0 : i32
    %c0_i32_1 = arith.constant 0 : i32
    return %c0_i32, %c0_i32_0 : i32, i32
  }
  func.func @transform_5(%arg0: i32) -> (i32, i32) {
    %c0_i32 = arith.constant 0 : i32
    %c0_i32_0 = arith.constant 0 : i32
    %c0_i32_1 = arith.constant 0 : i32
    return %c0_i32, %c0_i32_0 : i32, i32
  }
  func.func @transform_6(%arg0: i32) -> (i32, i32) {
    %c0_i32 = arith.constant 0 : i32
    %c0_i32_0 = arith.constant 0 : i32
    %c0_i32_1 = arith.constant 0 : i32
    return %c0_i32, %c0_i32_0 : i32, i32
  }
  func.func @transform_7(%arg0: i32) -> (i32, i32) {
    %c0_i32 = arith.constant 0 : i32
    %c0_i32_0 = arith.constant 0 : i32
    return %arg0, %c0_i32 : i32, i32
  }
}

</mosaic_0001>

<bundles_post_ra>
// kernel: _dqn_forward.1
= control target key start
LH: loop header
LB: loop body
LE: loop exit
PB: predicated region body
PF: predicated region fallthrough
CT: control target
= control target key end

     0   :  { %v446_v0 = vmov 0.0   ;;  %vm447_vm0 = vmmov 0   ;;  %vm53_vm1 = vcmask 261120   ;;  %vm328_vm2 = vcmask 64512   ;;  %s587_s1 = inlined_call_operand.vmem [shape: bf16[32,128], index: 1, kind: input, shape index: {}]   ;;  %s588_s0 = inlined_call_operand.vmem [shape: f32[16,32], index: 0, kind: input, shape index: {}]   ;;  %s589_s3 = inlined_call_operand.vmem [shape: bf16[128,128], index: 3, kind: input, shape index: {}]   ;;  %s590_s5 = inlined_call_operand.vmem [shape: bf16[128,8], index: 5, kind: input, shape index: {}]   ;;  %s591_s2 = inlined_call_operand.vmem [shape: f32[1,128], index: 2, kind: input, shape index: {}]   ;;  %s592_s4 = inlined_call_operand.vmem [shape: f32[1,128], index: 4, kind: input, shape index: {}]   ;;  %s593_s6 = inlined_call_operand.vmem [shape: f32[1,8], index: 6, kind: input, shape index: {}]   ;;  %s594_s7 = inlined_call_operand.vmem [shape: f32[16,8], index: 7, kind: output, shape index: {}]  }
   0x1   :  { %378 = vmatprep.subr.bf16.mxu0 %v446_v0  ;;  %v428_v1 = vld [vmem:[%s587_s1] sm:$0xff]   ;;  %382 = vmatprep.mubr.msk.bf16.mxu0 %vm447_vm0, %v446_v0  ;;  %v429_v2 = vld [vmem:[%s587_s1 + $0x8] sm:$0xff]   ;;  %v432_v8 = vld [vmem:[%s589_s3 + $0x10] sm:$0xff]  }
   0x2   :  { %386 = vmatprep.subr.bf16.mxu1 %v446_v0  ;;  %402 = vmatprep.mubr.msk.bf16.mxu1 %vm447_vm0, %v446_v0  ;;  %v27_v3 = vld [vmem:[%s588_s0] sm:$0xff]  ;;  %v28_v4 = vld [vmem:[%s588_s0 + $0x8] sm:$0xff]  ;;  %v433_v9 = vld [vmem:[%s589_s3 + $0x18] sm:$0xff]  }
   0x3   :  { %379 = vmatpush3.bf16.msra.mxu0 %v428_v1  ;;  %v430_v5 = vld [vmem:[%s589_s3] sm:$0xff]   ;;  %v29_v6 = vpack.c.bf16 %v28_v4, %v27_v3  ;;  %v431_v7 = vld [vmem:[%s589_s3 + $0x8] sm:$0xff]   ;;  %v436_v12 = vld [vmem:[%s589_s3 + $0x30] sm:$0xff]  }
   0x4   :  { %380 = vmatprep.subr.bf16.mxu0 %v446_v0  ;;  %387 = vmatpush3.bf16.msra.mxu1 %v430_v5  ;;  %v434_v10 = vld [vmem:[%s589_s3 + $0x20] sm:$0xff]   ;;  %v435_v11 = vld [vmem:[%s589_s3 + $0x28] sm:$0xff]   ;;  %v437_v13 = vld [vmem:[%s589_s3 + $0x38] sm:$0xff]  }
   0x5   :  { %388 = vmatprep.subr.bf16.mxu1 %v446_v0  ;;  %v438_v14 = vld [vmem:[%s590_s5] sm:$0xff]   ;;  %v439_v15 = vld [vmem:[%s590_s5 + $0x8] sm:$0xff]   ;;  %v440_v16 = vld [vmem:[%s590_s5 + $0x10] sm:$0xff]  }
   0x6   :  { %v441_v17 = vld [vmem:[%s590_s5 + $0x18] sm:$0xff]   ;;  %v442_v18 = vld [vmem:[%s590_s5 + $0x20] sm:$0xff]   ;;  %v443_v19 = vld [vmem:[%s590_s5 + $0x28] sm:$0xff]  }
   0x7   :  { %381 = vmatpush3.bf16.msra.mxu0 %v429_v2  ;;  %v335_v20 = vld [vmem:[%s591_s2] ss:$0 sm:$0xff]  ;;  %v444_v30 = vld [vmem:[%s590_s5 + $0x30] sm:$0xff]   ;;  %v445_v31 = vld [vmem:[%s590_s5 + $0x38] sm:$0xff]  }
   0x8   :  { %406 = vmatprep.subr.bf16.mxu0 %v446_v0  ;;  %389 = vmatpush3.bf16.msra.mxu1 %v431_v7  ;;  %v339_v32 = vld [vmem:[%s592_s4] ss:$0 sm:$0xff] }
   0x9   :  { %390 = vmatprep.subr.bf16.mxu1 %v446_v0  ;;  %v348_v42 = vld [vmem:[%s593_s6] ss:$0 sm:$0xff] }
   0xa   :  { %383 = vmatmul.mubr.msk.bf16.vlgmr.msra.gmra.mrb[0].mxu0 %vm53_vm1, %v29_v6 }
   0xb   :  { %422 = vmatprep.mubr.msk.bf16.mxu0 %vm447_vm0, %v446_v0  ;;  %407 = vmatpush3.bf16.msra.mxu0 %v438_v14 }
   0xc   :  { %391 = vmatpush3.bf16.msra.mxu1 %v432_v8  ;;  %408 = vmatprep.subr.bf16.mxu0 %v446_v0 }
   0xd   :  { %392 = vmatprep.subr.bf16.mxu1 %v446_v0 }
   0xf   :  { %409 = vmatpush3.bf16.msra.mxu0 %v439_v15 }
  0x10   :  { %393 = vmatpush3.bf16.msra.mxu1 %v433_v9  ;;  %410 = vmatprep.subr.bf16.mxu0 %v446_v0 }
  0x11   :  { %394 = vmatprep.subr.bf16.mxu1 %v446_v0 }
  0x13   :  { %411 = vmatpush3.bf16.msra.mxu0 %v440_v16 }
  0x14   :  { %395 = vmatpush3.bf16.msra.mxu1 %v434_v10  ;;  %412 = vmatprep.subr.bf16.mxu0 %v446_v0 }
  0x15   :  { %396 = vmatprep.subr.bf16.mxu1 %v446_v0 }
  0x17   :  { %413 = vmatpush3.bf16.msra.mxu0 %v441_v17 }
  0x18   :  { %397 = vmatpush3.bf16.msra.mxu1 %v435_v11  ;;  %414 = vmatprep.subr.bf16.mxu0 %v446_v0 }
  0x19   :  { %398 = vmatprep.subr.bf16.mxu1 %v446_v0 }
  0x1b   :  { %415 = vmatpush3.bf16.msra.mxu0 %v442_v18 }
  0x1c   :  { %399 = vmatpush3.bf16.msra.mxu1 %v436_v12  ;;  %416 = vmatprep.subr.bf16.mxu0 %v446_v0 }
  0x1d   :  { %400 = vmatprep.subr.bf16.mxu1 %v446_v0 }
  0x1f   :  { %417 = vmatpush3.bf16.msra.mxu0 %v443_v19 }
  0x20   :  { %401 = vmatpush3.bf16.msra.mxu1 %v437_v13  ;;  %418 = vmatprep.subr.bf16.mxu0 %v446_v0 }
  0x23   :  { %419 = vmatpush3.bf16.msra.mxu0 %v444_v30 }
  0x24   :  { %420 = vmatprep.subr.bf16.mxu0 %v446_v0 }
  0x27   :  { %421 = vmatpush3.bf16.msra.mxu0 %v445_v31 }
  0xdd   :  { %v91_v21 = vpop.f32.mrb[0].mxu0 }
  0xde   :  { %v92_v22 = vadd.f32 %v335_v20, %v91_v21  ;;  %v384_v23 = vpop.f32.mrb[1].mxu0 }
  0xdf   :  { %v94_v24 = vpop.f32.mrb[2].mxu0 }
  0xe0   :  { %v95_v25 = vadd.f32 %v335_v20, %v94_v24  ;;  %v385_v26 = vpop.f32.mrb[3].mxu0  ;;  %v98_v27 = vmax.f32 %v92_v22, 0.0 }
  0xe2   :  { %v99_v28 = vmax.f32 %v95_v25, 0.0 }
  0xe4   :  { %v100_v29 = vpack.c.bf16 %v99_v28, %v98_v27 }
  0xe6   :  { %403 = vmatmul.mubr.bf16.vlgmr.msra.gmra.mrb[0].mxu1 %v100_v29 }
 0x1b9   :  { %v206_v33 = vpop.f32.mrb[0].mxu1 }
 0x1ba   :  { %v207_v34 = vadd.f32 %v339_v32, %v206_v33  ;;  %v404_v35 = vpop.f32.mrb[1].mxu1 }
 0x1bb   :  { %v209_v36 = vpop.f32.mrb[2].mxu1 }
 0x1bc   :  { %v210_v37 = vadd.f32 %v339_v32, %v209_v36  ;;  %v405_v38 = vpop.f32.mrb[3].mxu1  ;;  %v213_v39 = vmax.f32 %v207_v34, 0.0 }
 0x1be   :  { %v214_v40 = vmax.f32 %v210_v37, 0.0 }
 0x1c0   :  { %v215_v41 = vpack.c.bf16 %v214_v40, %v213_v39 }
 0x1c2   :  { %423 = vmatmul.mubr.bf16.vlgmr.msra.gmra.mrb[4].mxu0 %v215_v41 }
 0x295   :  { %v321_v43 = vpop.f32.mrb[4].mxu0 }
 0x296   :  { %v322_v44 = vadd.f32 %v348_v42, %v321_v43  ;;  %v424_v45 = vpop.f32.mrb[5].mxu0 }
 0x297   :  { %v324_v46 = vpop.f32.mrb[6].mxu0 }
 0x298   :  { %329 = vst.msk [vmem:[%s594_s7] sm:$0xff] %vm328_vm2, %v322_v44  ;;  %v325_v47 = vadd.f32 %v348_v42, %v324_v46  ;;  %v425_v48 = vpop.f32.mrb[7].mxu0 }
 0x29a   :  { %330 = vst.msk [vmem:[%s594_s7 + $0x8] sm:$0xff] %vm328_vm2, %v325_v47 }

</bundles_post_ra>
